<compile_context>
chip_gen: v7x
topology: tpu7x:2x2x1
jax: 0.10.0
libtpu: 0.0.40
codegen_flags: <defaults>
</compile_context>

<pallas_src>
import jax
import jax.numpy as jnp
from jax.experimental import pallas as pl
from jax.experimental.pallas import tpu as pltpu

# ----------------------------------------------------------------------------
# Layer sizes (from the PyTorch module __init__) and lane-padded sizes.
# ----------------------------------------------------------------------------
LAYER_DIMS = [119, 360, 180, 100, 64, 32, 1]   # fc1..fc6
LANE = 128
DEFAULT_TILE_B = 1024


def _round_up(n, m):
    return ((n + m - 1) // m) * m


PAD_DIMS = [_round_up(d, LANE) for d in LAYER_DIMS]   # [128,384,256,128,128,128,128]


# ----------------------------------------------------------------------------
# Kernel
# ----------------------------------------------------------------------------
def mlp_kernel(x_ref,
               w1_ref, b1_ref,
               w2_ref, b2_ref,
               w3_ref, b3_ref,
               w4_ref, b4_ref,
               w5_ref, b5_ref,
               w6r_ref, b6_ref,
               o_ref):
    """Fused MLP forward on one (TILE_B, 128) batch tile."""
    h = x_ref[...]                                    # (TILE_B, 128) act dtype

    def layer(h, w_ref, b_ref):
        # bf16 operands into the MXU, f32 accumulation; bias add + ReLU run in
        # the activation dtype (bf16 on v6e/v7x, f32 if configured for v5e).
        y = jnp.dot(h.astype(w_ref.dtype), w_ref[...],
                    preferred_element_type=jnp.float32)
        y = y.astype(b_ref.dtype) + b_ref[...]
        return jnp.maximum(y, 0).astype(b_ref.dtype)

    h = layer(h, w1_ref, b1_ref)
    h = layer(h, w2_ref, b2_ref)
    h = layer(h, w3_ref, b3_ref)
    h = layer(h, w4_ref, b4_ref)
    h = layer(h, w5_ref, b5_ref)

    # fc6 (32 -> 1): VPU multiply + cross-lane reduce (XLU) instead of a matmul
    # that would be >99% padding; produces a lane-compact (TILE_B, 1) result.
    y = jnp.sum(h.astype(jnp.float32) * w6r_ref[...], axis=-1, keepdims=True)
    o_ref[...] = (y + b6_ref[...]).astype(o_ref.dtype)


# ----------------------------------------------------------------------------
# Tile selection
# ----------------------------------------------------------------------------
def _choose_tile_b(batch, max_tile_b, prefer_multi_step=True):
    """Pick (tile_b, b_pad): tile_b multiple of 8, minimal padded rows, and a
    grid of >= 2 steps whenever the batch allows it (v7x megacore)."""
    b8 = _round_up(batch, 8)
    cap = max(8, min(max_tile_b, b8))
    if prefer_multi_step and b8 >= 16:
        cap = min(cap, _round_up((b8 + 1) // 2, 8))   # force >= 2 grid steps
    cap = max(8, cap - cap % 8)
    best_tile, best_pad = cap, _round_up(b8, cap)
    # Small search below the cap for a tile wasting fewer padded rows.
    for t in range(cap, max(8, (3 * cap) // 4) - 1, -8):
        p = _round_up(b8, t)
        if p < best_pad:
            best_tile, best_pad = t, p
    return best_tile, best_pad


# ----------------------------------------------------------------------------
# Wrapper
# ----------------------------------------------------------------------------
def mlp_forward(x, padded_params, tile_b=DEFAULT_TILE_B, prefer_multi_step=True):
    """x: (B, 119).  padded_params: output of pad_params()."""
    B, F = x.shape
    assert F == LAYER_DIMS[0], (B, F)

    act_dtype = padded_params[0][1].dtype             # bias dtype == activation dtype
    tile_b, b_pad = _choose_tile_b(B, tile_b, prefer_multi_step)

    # Padded input built directly in the activation dtype (halves input DMA vs
    # f32; MXU operands were bf16 regardless).
    xp = jnp.zeros((b_pad, PAD_DIMS[0]), act_dtype)
    xp = xp.at[:B, :F].set(x.astype(act_dtype))

    flat_inputs = [xp]
    in_specs = [pl.BlockSpec((tile_b, PAD_DIMS[0]), lambda i: (i, 0))]
    for (w, b) in padded_params:
        flat_inputs += [w, b]
        # Constant block index -> weights/biases stay VMEM-resident across steps.
        in_specs += [pl.BlockSpec(w.shape, lambda i: (0, 0)),
                     pl.BlockSpec(b.shape, lambda i: (0, 0))]

    # Compact (B_pad, 1) output: no 128x write amplification.
    out_shape = jax.ShapeDtypeStruct((b_pad, 1), jnp.float32)
    out_spec = pl.BlockSpec((tile_b, 1), lambda i: (i, 0))

    fn = pl.pallas_call(
        mlp_kernel,
        out_shape=out_shape,
        grid=(b_pad // tile_b,),
        in_specs=in_specs,
        out_specs=out_spec,
        compiler_params=pltpu.CompilerParams(
            # Batch axis is independent work: lets multi-TC parts shard it.
            dimension_semantics=("parallel",),
        ),
    )
    out_padded = fn(*flat_inputs)
    return out_padded[:B]                             # (B, 1)


# ----------------------------------------------------------------------------
# Params: init (mirrors nn.Linear) and lane-padding / dtype policy.
# ----------------------------------------------------------------------------
def init_params(key):
    """f32 params; W stored (in, out), b (1, out) — nn.Linear-style init."""
    params = []
    for li in range(len(LAYER_DIMS) - 1):
        fan_in, fan_out = LAYER_DIMS[li], LAYER_DIMS[li + 1]
        key, kw, kb = jax.random.split(key, 3)
        bound = 1.0 / jnp.sqrt(fan_in)
        w = jax.random.uniform(kw, (fan_in, fan_out), jnp.float32,
                               minval=-bound, maxval=bound)
        b = jax.random.uniform(kb, (1, fan_out), jnp.float32,
                               minval=-bound, maxval=bound)
        params.append((w, b))
    return params


def pad_params(params, weight_dtype=jnp.bfloat16, act_dtype=jnp.bfloat16):
    """Zero-pad every layer to lane multiples.

    Layers 1..5: (W_pad[in_pad, out_pad] in weight_dtype, b_pad[1, out_pad] in
    act_dtype).  Layer 6 (out=1): stored as (w_row[1, in_pad] f32, b[1, 1] f32)
    for the in-kernel VPU dot.  Padded entries are exactly zero (ReLU(0)=0), so
    padding is mathematically exact.  Use act_dtype/weight_dtype=jnp.float32 for
    exact f32 semantics (slower on the MXU/VPU)."""
    padded = []
    n = len(params)
    for li, (w, b) in enumerate(params):
        if li < n - 1:
            din, dout = PAD_DIMS[li], PAD_DIMS[li + 1]
            wp = jnp.zeros((din, dout), weight_dtype)
            wp = wp.at[:w.shape[0], :w.shape[1]].set(w.astype(weight_dtype))
            bp = jnp.zeros((1, dout), act_dtype)
            bp = bp.at[:, :b.shape[1]].set(b.astype(act_dtype))
        else:
            din = PAD_DIMS[li]
            row = w[:, 0].astype(weight_dtype).astype(jnp.float32)   # (in,)
            wp = jnp.zeros((1, din), jnp.float32)
            wp = wp.at[0, :w.shape[0]].set(row)
            bp = b.astype(jnp.float32).reshape(1, 1)
        padded.append((wp, bp))
    return padded


# ----------------------------------------------------------------------------
# Plain-JAX references
# ----------------------------------------------------------------------------
def mlp_reference_matched(x, params, weight_dtype=jnp.bfloat16,
                          act_dtype=jnp.bfloat16):
    """Reference with the same dtype policy as the kernel."""
    n = len(params)
    h = x.astype(act_dtype)
    for i, (w, b) in enumerate(params):
        wq = w.astype(weight_dtype)
        if i < n - 1:
            y = jnp.dot(h.astype(weight_dtype), wq,
                        preferred_element_type=jnp.float32)
            y = y.astype(act_dtype) + b.astype(act_dtype)
            h = jnp.maximum(y, 0).astype(act_dtype)
        else:
            h = jnp.dot(h.astype(jnp.float32), wq.astype(jnp.float32),
                        preferred_element_type=jnp.float32) + b
    return h


def mlp_reference_f32(x, params):
    """Pure f32 reference (PyTorch nn.Linear semantics)."""
    h = x.astype(jnp.float32)
    for i, (w, b) in enumerate(params):
        h = jnp.dot(h, w, preferred_element_type=jnp.float32) + b
        if i < len(params) - 1:
            h = jnp.maximum(h, 0.0)
    return h


# ----------------------------------------------------------------------------
# Main
# ----------------------------------------------------------------------------
if __name__ == "__main__":
    key = jax.random.PRNGKey(0)
    key, kx = jax.random.split(key)

    params = init_params(key)
    padded_params = pad_params(params)                # bf16 weights & activations

    # Small latency case (single tile) and a multi-tile throughput case.
    for B in (8, 512):
        x = jax.random.normal(jax.random.fold_in(kx, B),
                              (B, LAYER_DIMS[0]), jnp.float32)

        out = jax.block_until_ready(mlp_forward(x, padded_params))
        assert out.shape == (B, 1), out.shape

        # Check vs a reference using the exact same dtype policy as the kernel.
        ref_m = mlp_reference_matched(x, params)
        assert jnp.allclose(out, ref_m, atol=2e-2, rtol=2e-2), \
            "mismatch vs matched-precision reference"

        # Loose sanity check vs pure-f32 (PyTorch) semantics.
        ref_f = mlp_reference_f32(x, params)
        assert jnp.allclose(out, ref_f, atol=1e-1, rtol=1e-1), \
            "mismatch vs f32 reference beyond bf16 tolerance"

    print("KERNEL_OK")
</pallas_src>

<mosaic_0001>
module attributes {stable_mosaic.version = 11 : i64} {
  func.func @mlp_kernel(%arg0: i32, %arg1: memref<8x128xbf16, #tpu.memory_space<vmem>>, %arg2: memref<128x384xbf16, #tpu.memory_space<vmem>>, %arg3: memref<1x384xbf16, #tpu.memory_space<vmem>>, %arg4: memref<384x256xbf16, #tpu.memory_space<vmem>>, %arg5: memref<1x256xbf16, #tpu.memory_space<vmem>>, %arg6: memref<256x128xbf16, #tpu.memory_space<vmem>>, %arg7: memref<1x128xbf16, #tpu.memory_space<vmem>>, %arg8: memref<128x128xbf16, #tpu.memory_space<vmem>>, %arg9: memref<1x128xbf16, #tpu.memory_space<vmem>>, %arg10: memref<128x128xbf16, #tpu.memory_space<vmem>>, %arg11: memref<1x128xbf16, #tpu.memory_space<vmem>>, %arg12: memref<1x128xf32, #tpu.memory_space<vmem>>, %arg13: memref<1x1xf32, #tpu.memory_space<vmem>>, %arg14: memref<8x1xf32, #tpu.memory_space<vmem>>) attributes {dimension_semantics = [#tpu.dimension_semantics<parallel>], iteration_bounds = array<i64: 1>, scalar_prefetch = 0 : i64, scratch_operands = 0 : i64, tpu.core_type = #tpu.core_type<tc>, window_params = [{transform_indices = @transform_0, window_bounds = array<i64: 8, 128>}, {pipeline_mode = #tpu.pipeline_mode<synchronous>, transform_indices = @transform_1, window_bounds = array<i64: 128, 384>}, {pipeline_mode = #tpu.pipeline_mode<synchronous>, transform_indices = @transform_2, window_bounds = array<i64: 1, 384>}, {pipeline_mode = #tpu.pipeline_mode<synchronous>, transform_indices = @transform_3, window_bounds = array<i64: 384, 256>}, {pipeline_mode = #tpu.pipeline_mode<synchronous>, transform_indices = @transform_4, window_bounds = array<i64: 1, 256>}, {pipeline_mode = #tpu.pipeline_mode<synchronous>, transform_indices = @transform_5, window_bounds = array<i64: 256, 128>}, {pipeline_mode = #tpu.pipeline_mode<synchronous>, transform_indices = @transform_6, window_bounds = array<i64: 1, 128>}, {pipeline_mode = #tpu.pipeline_mode<synchronous>, transform_indices = @transform_7, window_bounds = array<i64: 128, 128>}, {pipeline_mode = #tpu.pipeline_mode<synchronous>, transform_indices = @transform_8, window_bounds = array<i64: 1, 128>}, {pipeline_mode = #tpu.pipeline_mode<synchronous>, transform_indices = @transform_9, window_bounds = array<i64: 128, 128>}, {pipeline_mode = #tpu.pipeline_mode<synchronous>, transform_indices = @transform_10, window_bounds = array<i64: 1, 128>}, {pipeline_mode = #tpu.pipeline_mode<synchronous>, transform_indices = @transform_11, window_bounds = array<i64: 1, 128>}, {pipeline_mode = #tpu.pipeline_mode<synchronous>, transform_indices = @transform_12, window_bounds = array<i64: 1, 1>}, {transform_indices = @transform_13, window_bounds = array<i64: 8, 1>}]} {
    %c0 = arith.constant 0 : index
    %c0_0 = arith.constant 0 : index
    %0 = vector.load %arg1[%c0, %c0_0] : memref<8x128xbf16, #tpu.memory_space<vmem>>, vector<8x128xbf16>
    %c0_1 = arith.constant 0 : index
    %c0_2 = arith.constant 0 : index
    %1 = vector.load %arg2[%c0_1, %c0_2] : memref<128x384xbf16, #tpu.memory_space<vmem>>, vector<128x384xbf16>
    %cst = arith.constant dense<0.000000e+00> : vector<8x384xf32>
    %2 = tpu.matmul %0, %1, %cst {dimension_numbers = #tpu.dot_dimension_numbers<[1], [0], [0], [1], [0, 0, 1, 1], [], []>} : vector<8x128xbf16>, vector<128x384xbf16>, vector<8x384xf32> -> vector<8x384xf32>
    %3 = arith.truncf %2 : vector<8x384xf32> to vector<8x384xbf16>
    %c0_3 = arith.constant 0 : index
    %c0_4 = arith.constant 0 : index
    %4 = vector.load %arg3[%c0_3, %c0_4] : memref<1x384xbf16, #tpu.memory_space<vmem>>, vector<1x384xbf16>
    %5 = vector.broadcast %4 : vector<1x384xbf16> to vector<8x384xbf16>
    %6 = arith.addf %3, %5 : vector<8x384xbf16>
    %cst_5 = arith.constant 0.000000e+00 : bf16
    %7 = vector.broadcast %cst_5 : bf16 to vector<8x384xbf16>
    %8 = arith.maximumf %6, %7 : vector<8x384xbf16>
    %c0_6 = arith.constant 0 : index
    %c0_7 = arith.constant 0 : index
    %9 = vector.load %arg4[%c0_6, %c0_7] : memref<384x256xbf16, #tpu.memory_space<vmem>>, vector<384x256xbf16>
    %cst_8 = arith.constant dense<0.000000e+00> : vector<8x256xf32>
    %10 = tpu.matmul %8, %9, %cst_8 {dimension_numbers = #tpu.dot_dimension_numbers<[1], [0], [0], [1], [0, 0, 1, 1], [], []>} : vector<8x384xbf16>, vector<384x256xbf16>, vector<8x256xf32> -> vector<8x256xf32>
    %11 = arith.truncf %10 : vector<8x256xf32> to vector<8x256xbf16>
    %c0_9 = arith.constant 0 : index
    %c0_10 = arith.constant 0 : index
    %12 = vector.load %arg5[%c0_9, %c0_10] : memref<1x256xbf16, #tpu.memory_space<vmem>>, vector<1x256xbf16>
    %13 = vector.broadcast %12 : vector<1x256xbf16> to vector<8x256xbf16>
    %14 = arith.addf %11, %13 : vector<8x256xbf16>
    %cst_11 = arith.constant 0.000000e+00 : bf16
    %15 = vector.broadcast %cst_11 : bf16 to vector<8x256xbf16>
    %16 = arith.maximumf %14, %15 : vector<8x256xbf16>
    %c0_12 = arith.constant 0 : index
    %c0_13 = arith.constant 0 : index
    %17 = vector.load %arg6[%c0_12, %c0_13] : memref<256x128xbf16, #tpu.memory_space<vmem>>, vector<256x128xbf16>
    %cst_14 = arith.constant dense<0.000000e+00> : vector<8x128xf32>
    %18 = tpu.matmul %16, %17, %cst_14 {dimension_numbers = #tpu.dot_dimension_numbers<[1], [0], [0], [1], [0, 0, 1, 1], [], []>} : vector<8x256xbf16>, vector<256x128xbf16>, vector<8x128xf32> -> vector<8x128xf32>
    %19 = arith.truncf %18 : vector<8x128xf32> to vector<8x128xbf16>
    %c0_15 = arith.constant 0 : index
    %c0_16 = arith.constant 0 : index
    %20 = vector.load %arg7[%c0_15, %c0_16] : memref<1x128xbf16, #tpu.memory_space<vmem>>, vector<1x128xbf16>
    %21 = vector.broadcast %20 : vector<1x128xbf16> to vector<8x128xbf16>
    %22 = arith.addf %19, %21 : vector<8x128xbf16>
    %cst_17 = arith.constant 0.000000e+00 : bf16
    %23 = vector.broadcast %cst_17 : bf16 to vector<8x128xbf16>
    %24 = arith.maximumf %22, %23 : vector<8x128xbf16>
    %c0_18 = arith.constant 0 : index
    %c0_19 = arith.constant 0 : index
    %25 = vector.load %arg8[%c0_18, %c0_19] : memref<128x128xbf16, #tpu.memory_space<vmem>>, vector<128x128xbf16>
    %cst_20 = arith.constant dense<0.000000e+00> : vector<8x128xf32>
    %26 = tpu.matmul %24, %25, %cst_20 {dimension_numbers = #tpu.dot_dimension_numbers<[1], [0], [0], [1], [0, 0, 1, 1], [], []>} : vector<8x128xbf16>, vector<128x128xbf16>, vector<8x128xf32> -> vector<8x128xf32>
    %27 = arith.truncf %26 : vector<8x128xf32> to vector<8x128xbf16>
    %c0_21 = arith.constant 0 : index
    %c0_22 = arith.constant 0 : index
    %28 = vector.load %arg9[%c0_21, %c0_22] : memref<1x128xbf16, #tpu.memory_space<vmem>>, vector<1x128xbf16>
    %29 = vector.broadcast %28 : vector<1x128xbf16> to vector<8x128xbf16>
    %30 = arith.addf %27, %29 : vector<8x128xbf16>
    %cst_23 = arith.constant 0.000000e+00 : bf16
    %31 = vector.broadcast %cst_23 : bf16 to vector<8x128xbf16>
    %32 = arith.maximumf %30, %31 : vector<8x128xbf16>
    %c0_24 = arith.constant 0 : index
    %c0_25 = arith.constant 0 : index
    %33 = vector.load %arg10[%c0_24, %c0_25] : memref<128x128xbf16, #tpu.memory_space<vmem>>, vector<128x128xbf16>
    %cst_26 = arith.constant dense<0.000000e+00> : vector<8x128xf32>
    %34 = tpu.matmul %32, %33, %cst_26 {dimension_numbers = #tpu.dot_dimension_numbers<[1], [0], [0], [1], [0, 0, 1, 1], [], []>} : vector<8x128xbf16>, vector<128x128xbf16>, vector<8x128xf32> -> vector<8x128xf32>
    %35 = arith.truncf %34 : vector<8x128xf32> to vector<8x128xbf16>
    %c0_27 = arith.constant 0 : index
    %c0_28 = arith.constant 0 : index
    %36 = vector.load %arg11[%c0_27, %c0_28] : memref<1x128xbf16, #tpu.memory_space<vmem>>, vector<1x128xbf16>
    %37 = vector.broadcast %36 : vector<1x128xbf16> to vector<8x128xbf16>
    %38 = arith.addf %35, %37 : vector<8x128xbf16>
    %cst_29 = arith.constant 0.000000e+00 : bf16
    %39 = vector.broadcast %cst_29 : bf16 to vector<8x128xbf16>
    %40 = arith.maximumf %38, %39 : vector<8x128xbf16>
    %41 = arith.extf %40 : vector<8x128xbf16> to vector<8x128xf32>
    %c0_30 = arith.constant 0 : index
    %c0_31 = arith.constant 0 : index
    %42 = vector.load %arg12[%c0_30, %c0_31] : memref<1x128xf32, #tpu.memory_space<vmem>>, vector<1x128xf32>
    %43 = vector.broadcast %42 : vector<1x128xf32> to vector<8x128xf32>
    %44 = arith.mulf %41, %43 : vector<8x128xf32>
    %cst_32 = arith.constant dense<0.000000e+00> : vector<8xf32>
    %45 = vector.multi_reduction <add>, %44, %cst_32 [1] : vector<8x128xf32> to vector<8xf32>
    %46 = vector.shape_cast %45 : vector<8xf32> to vector<8x1xf32>
    %c0_33 = arith.constant 0 : index
    %c0_34 = arith.constant 0 : index
    %47 = vector.load %arg13[%c0_33, %c0_34] : memref<1x1xf32, #tpu.memory_space<vmem>>, vector<1x1xf32>
    %48 = vector.broadcast %47 : vector<1x1xf32> to vector<8x1xf32>
    %49 = arith.addf %46, %48 : vector<8x1xf32>
    %c0_35 = arith.constant 0 : index
    %c0_36 = arith.constant 0 : index
    %50 = vector.load %arg14[%c0_35, %c0_36] : memref<8x1xf32, #tpu.memory_space<vmem>>, vector<8x1xf32>
    tpu.vector_store %arg14[%c0_35, %c0_36], %49 {strides = array<i32>} : memref<8x1xf32, #tpu.memory_space<vmem>>, vector<8x1xf32>,
    return
  }
  func.func @transform_0(%arg0: i32) -> (i32, i32) {
    %c0_i32 = arith.constant 0 : i32
    %c0_i32_0 = arith.constant 0 : i32
    return %arg0, %c0_i32 : i32, i32
  }
  func.func @transform_1(%arg0: i32) -> (i32, i32) {
    %c0_i32 = arith.constant 0 : i32
    %c0_i32_0 = arith.constant 0 : i32
    %c0_i32_1 = arith.constant 0 : i32
    return %c0_i32, %c0_i32_0 : i32, i32
  }
  func.func @transform_2(%arg0: i32) -> (i32, i32) {
    %c0_i32 = arith.constant 0 : i32
    %c0_i32_0 = arith.constant 0 : i32
    %c0_i32_1 = arith.constant 0 : i32
    return %c0_i32, %c0_i32_0 : i32, i32
  }
  func.func @transform_3(%arg0: i32) -> (i32, i32) {
    %c0_i32 = arith.constant 0 : i32
    %c0_i32_0 = arith.constant 0 : i32
    %c0_i32_1 = arith.constant 0 : i32
    return %c0_i32, %c0_i32_0 : i32, i32
  }
  func.func @transform_4(%arg0: i32) -> (i32, i32) {
    %c0_i32 = arith.constant 0 : i32
    %c0_i32_0 = arith.constant 0 : i32
    %c0_i32_1 = arith.constant 0 : i32
    return %c0_i32, %c0_i32_0 : i32, i32
  }
  func.func @transform_5(%arg0: i32) -> (i32, i32) {
    %c0_i32 = arith.constant 0 : i32
    %c0_i32_0 = arith.constant 0 : i32
    %c0_i32_1 = arith.constant 0 : i32
    return %c0_i32, %c0_i32_0 : i32, i32
  }
  func.func @transform_6(%arg0: i32) -> (i32, i32) {
    %c0_i32 = arith.constant 0 : i32
    %c0_i32_0 = arith.constant 0 : i32
    %c0_i32_1 = arith.constant 0 : i32
    return %c0_i32, %c0_i32_0 : i32, i32
  }
  func.func @transform_7(%arg0: i32) -> (i32, i32) {
    %c0_i32 = arith.constant 0 : i32
    %c0_i32_0 = arith.constant 0 : i32
    %c0_i32_1 = arith.constant 0 : i32
    return %c0_i32, %c0_i32_0 : i32, i32
  }
  func.func @transform_8(%arg0: i32) -> (i32, i32) {
    %c0_i32 = arith.constant 0 : i32
    %c0_i32_0 = arith.constant 0 : i32
    %c0_i32_1 = arith.constant 0 : i32
    return %c0_i32, %c0_i32_0 : i32, i32
  }
  func.func @transform_9(%arg0: i32) -> (i32, i32) {
    %c0_i32 = arith.constant 0 : i32
    %c0_i32_0 = arith.constant 0 : i32
    %c0_i32_1 = arith.constant 0 : i32
    return %c0_i32, %c0_i32_0 : i32, i32
  }
  func.func @transform_10(%arg0: i32) -> (i32, i32) {
    %c0_i32 = arith.constant 0 : i32
    %c0_i32_0 = arith.constant 0 : i32
    %c0_i32_1 = arith.constant 0 : i32
    return %c0_i32, %c0_i32_0 : i32, i32
  }
  func.func @transform_11(%arg0: i32) -> (i32, i32) {
    %c0_i32 = arith.constant 0 : i32
    %c0_i32_0 = arith.constant 0 : i32
    %c0_i32_1 = arith.constant 0 : i32
    return %c0_i32, %c0_i32_0 : i32, i32
  }
  func.func @transform_12(%arg0: i32) -> (i32, i32) {
    %c0_i32 = arith.constant 0 : i32
    %c0_i32_0 = arith.constant 0 : i32
    %c0_i32_1 = arith.constant 0 : i32
    return %c0_i32, %c0_i32_0 : i32, i32
  }
  func.func @transform_13(%arg0: i32) -> (i32, i32) {
    %c0_i32 = arith.constant 0 : i32
    %c0_i32_0 = arith.constant 0 : i32
    return %arg0, %c0_i32 : i32, i32
  }
}

</mosaic_0001>

<bundles_post_ra>
// kernel: tpu_custom_call.1
= control target key start
LH: loop header
LB: loop body
LE: loop exit
PB: predicated region body
PF: predicated region fallthrough
CT: control target
= control target key end

     0   :  { %s2050_s0 = inlined_call_operand.hbm [shape: bf16[8,128], index: 0, kind: input, shape index: {}]   ;;  %s2051_s1 = inlined_call_operand.hbm [shape: bf16[128,384], index: 1, kind: input, shape index: {}]   ;;  %s2052_s2 = inlined_call_operand.vmem [shape: bf16[1,384], index: 2, kind: input, shape index: {}]   ;;  %s2053_s3 = inlined_call_operand.hbm [shape: bf16[384,256], index: 3, kind: input, shape index: {}]   ;;  %s2054_s4 = inlined_call_operand.vmem [shape: bf16[1,256], index: 4, kind: input, shape index: {}]   ;;  %s2055_s5 = inlined_call_operand.hbm [shape: bf16[256,128], index: 5, kind: input, shape index: {}]   ;;  %s2056_s6 = inlined_call_operand.vmem [shape: bf16[1,128], index: 6, kind: input, shape index: {}]   ;;  %s2057_s7 = inlined_call_operand.hbm [shape: bf16[128,128], index: 7, kind: input, shape index: {}]   ;;  %s2058_s8 = inlined_call_operand.vmem [shape: bf16[1,128], index: 8, kind: input, shape index: {}]   ;;  %s2059_s9 = inlined_call_operand.hbm [shape: bf16[128,128], index: 9, kind: input, shape index: {}]   ;;  %s2060_s10 = inlined_call_operand.vmem [shape: bf16[1,128], index: 10, kind: input, shape index: {}]   ;;  %s2061_s11 = inlined_call_operand.vmem [shape: f32[1,128], index: 11, kind: input, shape index: {}]   ;;  %s2062_s12 = inlined_call_operand.<no memory space> [shape: f32[1,1], index: 12, kind: input, shape index: {}]   ;;  %s2063_s13 = inlined_call_operand.vmem [shape: f32[8,1], index: 13, kind: output, shape index: {}]  }
   0x1   :  { %v18_v0 = vstv %s2062_s12 }
   0x2   :  { %19 = vst [vmem:[#allocation2] sm:$0x1] %v18_v0 }
   0x3   :  { %20 = vsyncpa [#allocation4], 0 }
   0x4   :  { %21 = vsyncpa [#allocation6], 0 }
   0x5   :  { %22 = vsyncpa [#allocation9], 0 }
   0x6   :  { %23 = vsyncpa [#allocation12], 0  ;;  %s1789_s27 = smov [#allocation5]   ;;  %s1649_s14 = scalar_lea.hbm %s2051_s1, 3072 }
   0x7   :  { %s39_s28 = sshll.u32 %s1789_s27, 4  ;;  %p1650_p0 = scmp.ne.s32.totalorder %s2051_s1, %s1649_s14  ;;  %s40_s28 = int_to_ptr.vmem [resolvable:$true] %s39_s28 }
   0x8   :  { %p1653_p1 = scmp.lt.u32.totalorder %s1649_s14, %s2051_s1 }
   0xa   :  { %p1655_p2 = pnand %p1653_p1, %p1650_p0 }
   0xc   :  { %1658 = shalt.err (!%p1655_p2)
}
   0xd   :  { %s1659_s12 = scalar_lea.vmem %s40_s28, 3072  ;;  %p1664_p4 = scmp.lt.s32.totalorder %s40_s28, %s40_s28 }
   0xe   :  { %p1660_p3 = scmp.ne.s32.totalorder %s40_s28, %s1659_s12  ;;  %p1665_p5 = scmp.lt.s32.totalorder %s1659_s12, %s1659_s12 }
  0x10   :  { %p1666_p6 = por %p1665_p5, %p1664_p4 }
  0x12   :  { %p1667_p7 = pnand %p1666_p6, %p1660_p3 }
  0x14   :  { %1670 = shalt.err (!%p1667_p7)
}
  0x15   :  { %s1790_s19 = smov 192   ;;  %s1791_s20 = smov 12  }
  0x16   :  { %45 = dma.hbm_to_vmem [thread:$0]  %s2051_s1, 3072, %s40_s28, [#allocation6], %s1790_s19, %s1790_s19, %s1791_s20  }
  0x17   :  { %s1792_s23 = smov [#allocation8]   ;;  %s1671_s27 = scalar_lea.hbm %s2055_s5, 2048 }
  0x18   :  { %s67_s24 = sshll.u32 %s1792_s23, 4  ;;  %p1672_p8 = scmp.ne.s32.totalorder %s2055_s5, %s1671_s27  ;;  %s68_s24 = int_to_ptr.vmem [resolvable:$true] %s67_s24 }
  0x19   :  { %p1675_p9 = scmp.lt.u32.totalorder %s1671_s27, %s2055_s5 }
  0x1b   :  { %p1677_p10 = pnand %p1675_p9, %p1672_p8 }
  0x1d   :  { %1680 = shalt.err (!%p1677_p10)
}
  0x1e   :  { %s1681_s16 = scalar_lea.vmem %s68_s24, 2048  ;;  %p1686_p12 = scmp.lt.s32.totalorder %s68_s24, %s68_s24 }
  0x1f   :  { %p1682_p11 = scmp.ne.s32.totalorder %s68_s24, %s1681_s16  ;;  %p1687_p13 = scmp.lt.s32.totalorder %s1681_s16, %s1681_s16 }
  0x21   :  { %p1688_p0 = por %p1687_p13, %p1686_p12 }
  0x23   :  { %p1689_p1 = pnand %p1688_p0, %p1682_p11 }
  0x25   :  { %1692 = shalt.err (!%p1689_p1)
}
  0x26   :  { %s1793_s1 = smov 64   ;;  %s1794_s28 = smov 4  }
  0x27   :  { %73 = dma.hbm_to_vmem [thread:$0]  %s2055_s5, 2048, %s68_s24, [#allocation9], %s1793_s1, %s1793_s1, %s1794_s28  }
  0x28   :  { %s1795_s12 = smov [#allocation3]   ;;  %s1796_s20 = smov [#allocation7]  }
  0x29   :  { %s30_s19 = sshll.u32 %s1795_s12, 4  ;;  %s53_s21 = sshll.u32 %s1796_s20, 4  ;;  %s31_s19 = int_to_ptr.vmem [resolvable:$true] %s30_s19  ;;  %s1905_s21 = int_to_ptr.vmem [resolvable:$true] %s53_s21 }
  0x2a   :  { %s1693_s25 = scalar_lea.hbm %s2050_s0, 64 }
  0x2b   :  { %p1694_p2 = scmp.ne.s32.totalorder %s2050_s0, %s1693_s25  ;;  %p1697_p3 = scmp.lt.u32.totalorder %s1693_s25, %s2050_s0 }
  0x2d   :  { %p1699_p4 = pnand %p1697_p3, %p1694_p2 }
  0x2f   :  { %1702 = shalt.err (!%p1699_p4)
}
  0x30   :  { %s1703_s5 = scalar_lea.vmem %s31_s19, 64  ;;  %p1708_p6 = scmp.lt.s32.totalorder %s31_s19, %s31_s19 }
  0x31   :  { %p1704_p5 = scmp.ne.s32.totalorder %s31_s19, %s1703_s5  ;;  %p1709_p7 = scmp.lt.s32.totalorder %s1703_s5, %s1703_s5 }
  0x33   :  { %p1710_p8 = por %p1709_p7, %p1708_p6 }
  0x35   :  { %p1711_p9 = pnand %p1710_p8, %p1704_p5 }
  0x37   :  { %1714 = shalt.err (!%p1711_p9)
}
  0x38   :  { %33 = dma.hbm_to_vmem [thread:$0]  %s2050_s0, 64, %s31_s19, [#allocation4]  }
  0x39   :  { %s1715_s17 = scalar_lea.hbm %s2053_s3, 6144 }
  0x3a   :  { %p1716_p10 = scmp.ne.s32.totalorder %s2053_s3, %s1715_s17  ;;  %p1719_p11 = scmp.lt.u32.totalorder %s1715_s17, %s2053_s3 }
  0x3c   :  { %p1721_p12 = pnand %p1719_p11, %p1716_p10 }
  0x3e   :  { %1724 = shalt.err (!%p1721_p12)
}
  0x3f   :  { %s1725_s23 = scalar_lea.vmem %s1905_s21, 6144  ;;  %p1730_p0 = scmp.lt.s32.totalorder %s1905_s21, %s1905_s21 }
  0x40   :  { %p1726_p13 = scmp.ne.s32.totalorder %s1905_s21, %s1725_s23  ;;  %p1731_p1 = scmp.lt.s32.totalorder %s1725_s23, %s1725_s23 }
  0x42   :  { %p1732_p2 = por %p1731_p1, %p1730_p0 }
  0x44   :  { %p1733_p3 = pnand %p1732_p2, %p1726_p13 }
  0x46   :  { %1736 = shalt.err (!%p1733_p3)
}
  0x47   :  { %s1797_s0 = smov 128   ;;  %s1798_s19 = smov 8  }
  0x48   :  { %59 = dma.hbm_to_vmem [thread:$0]  %s2053_s3, 6144, %s1905_s21, [#allocation6], %s1797_s0, %s1797_s0, %s1798_s19  }
  0x49   :  { %s1799_s27 = smov [#allocation10]   ;;  %s1800_s30 = smov [#allocation11]  }
  0x4a   :  { %s81_s29 = sshll.u32 %s1799_s27, 4  ;;  %s95_s5 = sshll.u32 %s1800_s30, 4  ;;  %s82_s29 = int_to_ptr.vmem [resolvable:$true] %s81_s29  ;;  %s1936_s5 = int_to_ptr.vmem [resolvable:$true] %s95_s5 }
  0x4b   :  { %s1737_s15 = scalar_lea.hbm %s2057_s7, 1024 }
  0x4c   :  { %p1738_p4 = scmp.ne.s32.totalorder %s2057_s7, %s1737_s15  ;;  %p1741_p5 = scmp.lt.u32.totalorder %s1737_s15, %s2057_s7 }
  0x4e   :  { %p1743_p6 = pnand %p1741_p5, %p1738_p4 }
  0x50   :  { %1746 = shalt.err (!%p1743_p6)
}
  0x51   :  { %s1747_s3 = scalar_lea.vmem %s82_s29, 1024  ;;  %p1752_p8 = scmp.lt.s32.totalorder %s82_s29, %s82_s29 }
  0x52   :  { %p1748_p7 = scmp.ne.s32.totalorder %s82_s29, %s1747_s3  ;;  %p1753_p9 = scmp.lt.s32.totalorder %s1747_s3, %s1747_s3 }
  0x54   :  { %p1754_p10 = por %p1753_p9, %p1752_p8 }
  0x56   :  { %p1755_p11 = pnand %p1754_p10, %p1748_p7 }
  0x58   :  { %1758 = shalt.err (!%p1755_p11)
}
  0x59   :  { %87 = dma.hbm_to_vmem [thread:$0]  %s2057_s7, 1024, %s82_s29, [#allocation9], %s1793_s1, %s1793_s1, %s1794_s28  }
  0x5a   :  { %s1759_s0 = scalar_lea.hbm %s2059_s9, 1024 }
  0x5b   :  { %p1760_p12 = scmp.ne.s32.totalorder %s2059_s9, %s1759_s0  ;;  %p1763_p13 = scmp.lt.u32.totalorder %s1759_s0, %s2059_s9 }
  0x5d   :  { %p1765_p0 = pnand %p1763_p13, %p1760_p12 }
  0x5f   :  { %1768 = shalt.err (!%p1765_p0)
}
  0x60   :  { %s1769_s30 = scalar_lea.vmem %s1936_s5, 1024  ;;  %p1774_p2 = scmp.lt.s32.totalorder %s1936_s5, %s1936_s5 }
  0x61   :  { %p1770_p1 = scmp.ne.s32.totalorder %s1936_s5, %s1769_s30  ;;  %p1775_p3 = scmp.lt.s32.totalorder %s1769_s30, %s1769_s30 }
  0x63   :  { %p1776_p4 = por %p1775_p3, %p1774_p2 }
  0x65   :  { %p1777_p5 = pnand %p1776_p4, %p1770_p1 }
  0x67   :  { %1780 = shalt.err (!%p1777_p5)
}
  0x68   :  { %101 = dma.hbm_to_vmem [thread:$0]  %s2059_s9, 1024, %s1936_s5, [#allocation12], %s1793_s1, %s1793_s1, %s1794_s28  }
  0x69   :  { %1781 = dma.done.wait [#allocation4], 64  }
  0x6a   :  { %1782 = vsyncadd [#allocation4], 4294967232 }
  0x6b   :  { %1783 = dma.done.wait [#allocation6], 9216  }
  0x6c   :  { %1784 = vsyncadd [#allocation6], 4294958080 }
  0x6d   :  { %1785 = dma.done.wait [#allocation9], 3072  }
  0x6e   :  { %1786 = vsyncadd [#allocation9], 4294964224 }
  0x6f   :  { %1787 = dma.done.wait [#allocation12], 1024  }
  0x70   :  { %1788 = vsyncadd [#allocation12], 4294966272  ;;  %v1801_v1 = vmov 0.0   ;;  %v1802_v2 = vmov 0   ;;  %vm1803_vm0 = vmmov 0   ;;  %v1617_v61 = vld [vmem:[#allocation8 + $0x40] sm:$0xff]  }
  0x71   :  { %1433 = vmatprep.subr.bf16.mxu1 %v1801_v1  ;;  %320 = vmatprep.mubr.bf16.mxu0 %v1802_v2  ;;  %v1513_v3 = vld [vmem:[#allocation5 + $0x4] ss:$12 sps:$4 sm:$0xff]   ;;  %v1515_v4 = vld [vmem:[#allocation5] ss:$12 sps:$4 sm:$0xff]   ;;  %v1516_v5 = vld [vmem:[#allocation5 + $0x1c] ss:$12 sps:$4 sm:$0xff]  }
  0x72   :  { %1449 = vmatprep.mubr.msk.bf16.mxu1 %vm1803_vm0, %v1801_v1  ;;  %288 = vmatprep.subr.bf16.mxu0 %v1513_v3  ;;  %v1518_v6 = vld [vmem:[#allocation5 + $0x18] ss:$12 sps:$4 sm:$0xff]   ;;  %v1519_v7 = vld [vmem:[#allocation5 + $0x34] ss:$12 sps:$4 sm:$0xff]   ;;  %v1521_v8 = vld [vmem:[#allocation5 + $0x30] ss:$12 sps:$4 sm:$0xff]  }
  0x73   :  { %289 = vmatpush1.bf16.msra.mxu0 %v1515_v4  ;;  %v1522_v9 = vld [vmem:[#allocation5 + $0x4c] ss:$12 sps:$4 sm:$0xff]   ;;  %v1524_v10 = vld [vmem:[#allocation5 + $0x48] ss:$12 sps:$4 sm:$0xff]   ;;  %v1525_v12 = vld [vmem:[#allocation5 + $0x64] ss:$12 sps:$4 sm:$0xff]  }
  0x74   :  { %290 = vmatprep.subr.bf16.mxu0 %v1516_v5  ;;  %v1537_v11 = vld [vmem:[#allocation5 + $0x8] ss:$12 sps:$4 sm:$0xff]   ;;  %v1538_v13 = vld [vmem:[#allocation5 + $0x20] ss:$12 sps:$4 sm:$0xff]   ;;  %v1539_v16 = vld [vmem:[#allocation5 + $0x38] ss:$12 sps:$4 sm:$0xff]  }
  0x75   :  { %1434 = vmatpush3.bf16.msra.mxu1 %v1537_v11  ;;  %v1527_v14 = vld [vmem:[#allocation5 + $0x60] ss:$12 sps:$4 sm:$0xff]   ;;  %v1528_v15 = vld [vmem:[#allocation5 + $0x7c] ss:$12 sps:$4 sm:$0xff]   ;;  %v1530_v17 = vld [vmem:[#allocation5 + $0x78] ss:$12 sps:$4 sm:$0xff]  }
  0x76   :  { %1435 = vmatprep.subr.bf16.mxu1 %v1801_v1  ;;  %v1531_v18 = vld [vmem:[#allocation5 + $0x94] ss:$12 sps:$4 sm:$0xff]   ;;  %v1540_v19 = vld [vmem:[#allocation5 + $0x50] ss:$12 sps:$4 sm:$0xff]   ;;  %v1534_v21 = vld [vmem:[#allocation5 + $0xac] ss:$12 sps:$4 sm:$0xff]  }
  0x77   :  { %291 = vmatpush1.bf16.msra.mxu0 %v1518_v6  ;;  %v1533_v20 = vld [vmem:[#allocation5 + $0x90] ss:$12 sps:$4 sm:$0xff]   ;;  %v1541_v22 = vld [vmem:[#allocation5 + $0x68] ss:$12 sps:$4 sm:$0xff]   ;;  %v1547_v24 = vld [vmem:[#allocation7 + $0x4] ss:$8 sps:$4 sm:$0xff]  }
  0x78   :  { %292 = vmatprep.subr.bf16.mxu0 %v1519_v7  ;;  %v1536_v23 = vld [vmem:[#allocation5 + $0xa8] ss:$12 sps:$4 sm:$0xff]   ;;  %v1542_v25 = vld [vmem:[#allocation5 + $0x80] ss:$12 sps:$4 sm:$0xff]   ;;  %v127_v26 = vld [vmem:[#allocation3] sm:$0xf] }
  0x79   :  { %1436 = vmatpush3.bf16.msra.mxu1 %v1538_v13  ;;  %v1545_v27 = vld [vmem:[#allocation7] ss:$8 sps:$4 sm:$0xff]   ;;  %v1550_v28 = vld [vmem:[#allocation7 + $0x14] ss:$8 sps:$4 sm:$0xff]   ;;  %v1543_v29 = vld [vmem:[#allocation5 + $0x98] ss:$12 sps:$4 sm:$0xff]   ;;  %v385_v13 = vlaneseq }
  0x7a   :  { %1437 = vmatprep.subr.bf16.mxu1 %v1801_v1  ;;  %v1548_v30 = vld [vmem:[#allocation7 + $0x10] ss:$8 sps:$4 sm:$0xff]   ;;  %v1553_v31 = vld [vmem:[#allocation7 + $0x24] ss:$8 sps:$4 sm:$0xff]   ;;  %v1551_v33 = vld [vmem:[#allocation7 + $0x20] ss:$8 sps:$4 sm:$0xff]  }
  0x7b   :  { %293 = vmatpush1.bf16.msra.mxu0 %v1521_v8  ;;  %v1544_v32 = vld [vmem:[#allocation5 + $0xb0] ss:$12 sps:$4 sm:$0xff]   ;;  %v1559_v36 = vld [vmem:[#allocation7 + $0x44] ss:$8 sps:$4 sm:$0xff]   ;;  %v1557_v37 = vld [vmem:[#allocation7 + $0x40] ss:$8 sps:$4 sm:$0xff]  }
  0x7c   :  { %294 = vmatprep.subr.bf16.mxu0 %v1522_v9  ;;  %v1556_v34 = vld [vmem:[#allocation7 + $0x34] ss:$8 sps:$4 sm:$0xff]   ;;  %v1554_v35 = vld [vmem:[#allocation7 + $0x30] ss:$8 sps:$4 sm:$0xff]   ;;  %v1565_v40 = vld [vmem:[#allocation7 + $0x64] ss:$8 sps:$4 sm:$0xff]  }
  0x7d   :  { %1438 = vmatpush3.bf16.msra.mxu1 %v1539_v16  ;;  %v1562_v38 = vld [vmem:[#allocation7 + $0x54] ss:$8 sps:$4 sm:$0xff]   ;;  %v1560_v39 = vld [vmem:[#allocation7 + $0x50] ss:$8 sps:$4 sm:$0xff]   ;;  %v1563_v41 = vld [vmem:[#allocation7 + $0x60] ss:$8 sps:$4 sm:$0xff]  }
  0x7e   :  { %1439 = vmatprep.subr.bf16.mxu1 %v1801_v1  ;;  %v1568_v42 = vld [vmem:[#allocation7 + $0x74] ss:$8 sps:$4 sm:$0xff]   ;;  %v1566_v43 = vld [vmem:[#allocation7 + $0x70] ss:$8 sps:$4 sm:$0xff]   ;;  %v1571_v44 = vld [vmem:[#allocation7 + $0x84] ss:$8 sps:$4 sm:$0xff]  }
  0x7f   :  { %295 = vmatpush1.bf16.msra.mxu0 %v1524_v10  ;;  %v1569_v45 = vld [vmem:[#allocation7 + $0x80] ss:$8 sps:$4 sm:$0xff]   ;;  %v1574_v46 = vld [vmem:[#allocation7 + $0x94] ss:$8 sps:$4 sm:$0xff]   ;;  %v1572_v47 = vld [vmem:[#allocation7 + $0x90] ss:$8 sps:$4 sm:$0xff]  }
  0x80   :  { %296 = vmatprep.subr.bf16.mxu0 %v1525_v12  ;;  %v1577_v48 = vld [vmem:[#allocation7 + $0xa4] ss:$8 sps:$4 sm:$0xff]   ;;  %v1575_v49 = vld [vmem:[#allocation7 + $0xa0] ss:$8 sps:$4 sm:$0xff]   ;;  %v1580_v50 = vld [vmem:[#allocation7 + $0xb4] ss:$8 sps:$4 sm:$0xff]  }
  0x81   :  { %1440 = vmatpush3.bf16.msra.mxu1 %v1540_v19  ;;  %v1578_v51 = vld [vmem:[#allocation7 + $0xb0] ss:$8 sps:$4 sm:$0xff]   ;;  %v1583_v52 = vld [vmem:[#allocation7 + $0xc4] ss:$8 sps:$4 sm:$0xff]   ;;  %v1581_v53 = vld [vmem:[#allocation7 + $0xc0] ss:$8 sps:$4 sm:$0xff]  }
  0x82   :  { %1441 = vmatprep.subr.bf16.mxu1 %v1801_v1  ;;  %v1586_v54 = vld [vmem:[#allocation7 + $0xd4] ss:$8 sps:$4 sm:$0xff]   ;;  %v1584_v55 = vld [vmem:[#allocation7 + $0xd0] ss:$8 sps:$4 sm:$0xff]   ;;  %v1589_v56 = vld [vmem:[#allocation7 + $0xe4] ss:$8 sps:$4 sm:$0xff]  }
  0x83   :  { %297 = vmatpush1.bf16.msra.mxu0 %v1527_v14  ;;  %v1587_v57 = vld [vmem:[#allocation7 + $0xe0] ss:$8 sps:$4 sm:$0xff]   ;;  %v1592_v58 = vld [vmem:[#allocation7 + $0xf4] ss:$8 sps:$4 sm:$0xff]   ;;  %v1590_v59 = vld [vmem:[#allocation7 + $0xf0] ss:$8 sps:$4 sm:$0xff]  }
  0x84   :  { %298 = vmatprep.subr.bf16.mxu0 %v1528_v15  ;;  %v1595_v60 = vld [vmem:[#allocation7 + $0x104] ss:$8 sps:$4 sm:$0xff]   ;;  %v1621_v3 = vld [vmem:[#allocation8 + $0x50] sm:$0xff]   ;;  %v1623_v5 = vld [vmem:[#allocation8 + $0x58] sm:$0xff]   ;;  %v1804_v11 = vmov 1966171168  }
  0x85   :  { %1442 = vmatpush3.bf16.msra.mxu1 %v1541_v22  ;;  %v1618_v62 = vld [vmem:[#allocation8] sm:$0xff]   ;;  %v1619_v63 = vld [vmem:[#allocation8 + $0x48] sm:$0xff]   ;;  %v1622_v4 = vld [vmem:[#allocation8 + $0x10] sm:$0xff]   ;;  %v383_v12 = vunpack.c.l.s4 %v1804_v11  ;;  %v386_v15 = vshrl.u32 %v385_v13, 7  ;;  %vm1266_vm1 = vcmask 7168  }
  0x86   :  { %1443 = vmatprep.subr.bf16.mxu1 %v1801_v1  ;;  %v1620_v0 = vld [vmem:[#allocation8 + $0x8] sm:$0xff]   ;;  %v1624_v6 = vld [vmem:[#allocation8 + $0x18] sm:$0xff]   ;;  %v1625_v7 = vld [vmem:[#allocation8 + $0x60] sm:$0xff]  }
  0x87   :  { %299 = vmatpush1.bf16.msra.mxu0 %v1530_v17  ;;  %v1626_v8 = vld [vmem:[#allocation8 + $0x20] sm:$0xff]   ;;  %v1627_v9 = vld [vmem:[#allocation8 + $0x68] sm:$0xff]   ;;  %v384_v14 = vunpack.c.0.s8 %v383_v12  ;;  %v1300_v16 = vld.sshfl [vmem:[%s2052_s2] sm:$0x13 pattern:$0x75316420] }
  0x88   :  { %300 = vmatprep.subr.bf16.mxu0 %v1531_v18  ;;  %v1628_v10 = vld [vmem:[#allocation8 + $0x28] sm:$0xff]   ;;  %v381_v18 = vcombine.high %v1300_v16, %v1300_v16  ;;  %v1991_v22 = vsub.s32 0, %v386_v15 }
  0x89   :  { %1444 = vmatpush3.bf16.msra.mxu1 %v1542_v25  ;;  %v1987_v17 = vsub.s32 %v384_v14, %v386_v15 }
  0x8a   :  { %1445 = vmatprep.subr.bf16.mxu1 %v1801_v1 }
  0x8b   :  { %301 = vmatpush1.bf16.msra.mxu0 %v1533_v20  ;;  %v388_v19 = vrot.slane %v1300_v16, %v1987_v17  ;;  %v395_v20 = vrot.slane %v381_v18, %v1987_v17 }
  0x8c   :  { %302 = vmatprep.subr.bf16.mxu0 %v1534_v21 }
  0x8d   :  { %1446 = vmatpush3.bf16.msra.mxu1 %v1543_v29  ;;  %v398_v21 = vpack.i.b16 %v388_v19, %v388_v19 }
  0x8e   :  { %1447 = vmatprep.subr.bf16.mxu1 %v1801_v1 }
  0x8f   :  { %303 = vmatpush1.bf16.msra.mxu0 %v1536_v23  ;;  %v405_v23 = vpack.i.b16 %v395_v20, %v395_v20 }
  0x90   :  { %712 = vmatprep.subr.bf16.mxu0 %v1547_v24  ;;  %v403_v24 = vrot.slane %v398_v21, %v1991_v22  ;;  %v1633_v21 = vld [vmem:[#allocation10] sm:$0xff]  }
  0x91   :  { %1448 = vmatpush3.bf16.msra.mxu1 %v1544_v32 }
  0x92   :  { %321 = vmatmul.mubr.bf16.vlgmr.msra.gmra.mrb[0].mxu0 %v127_v26  ;;  %1393 = vmatprep.subr.bf16.mxu1 %v1617_v61  ;;  %v1629_v61 = vld [vmem:[#allocation8 + $0x70] sm:$0xff]  }
  0x93   :  { %713 = vmatpush1.bf16.msra.mxu0 %v1545_v27 }
  0x94   :  { %714 = vmatprep.subr.bf16.mxu0 %v1550_v28  ;;  %1450 = vmatmul.mubr.bf16.vlgmr.msra.gmra.mrb[0].mxu1 %v127_v26  ;;  %v410_v26 = vrot.slane %v405_v23, %v1991_v22 }
  0x95   :  { %1394 = vmatpush3.bf16.msra.mxu1 %v1618_v62  ;;  %v1630_v62 = vld [vmem:[#allocation8 + $0x30] sm:$0xff]  }
  0x96   :  { %1395 = vmatprep.subr.bf16.mxu1 %v1619_v63  ;;  %v1631_v63 = vld [vmem:[#allocation8 + $0x78] sm:$0xff]  }
  0x97   :  { %715 = vmatpush1.bf16.msra.mxu0 %v1548_v30 }
  0x98   :  { %716 = vmatprep.subr.bf16.mxu0 %v1553_v31 }
  0x99   :  { %1396 = vmatpush3.bf16.msra.mxu1 %v1620_v0  ;;  %v1632_v0 = vld [vmem:[#allocation8 + $0x38] sm:$0xff]  }
  0x9a   :  { %1397 = vmatprep.subr.bf16.mxu1 %v1621_v3  ;;  %v1349_v3 = vld.sshfl [vmem:[%s2054_s4] sm:$0x11 pattern:$0x75316420] }
  0x9b   :  { %717 = vmatpush1.bf16.msra.mxu0 %v1551_v33 }
  0x9c   :  { %718 = vmatprep.subr.bf16.mxu0 %v1556_v34 }
  0x9d   :  { %1398 = vmatpush3.bf16.msra.mxu1 %v1622_v4  ;;  %v805_v4 = vcombine.high %v1349_v3, %v1349_v3 }
  0x9e   :  { %1399 = vmatprep.subr.bf16.mxu1 %v1623_v5  ;;  %v812_v5 = vrot.slane %v1349_v3, %v1987_v17 }
  0x9f   :  { %719 = vmatpush1.bf16.msra.mxu0 %v1554_v35  ;;  %v1593_v35 = vld [vmem:[#allocation7 + $0x100] ss:$8 sps:$4 sm:$0xff]  }
  0xa0   :  { %720 = vmatprep.subr.bf16.mxu0 %v1559_v36 }
  0xa1   :  { %1400 = vmatpush3.bf16.msra.mxu1 %v1624_v6  ;;  %v819_v6 = vrot.slane %v805_v4, %v1987_v17  ;;  %v1634_v17 = vld [vmem:[#allocation10 + $0x8] sm:$0xff]  }
  0xa2   :  { %1401 = vmatprep.subr.bf16.mxu1 %v1625_v7  ;;  %v821_v7 = vpack.i.b16 %v812_v5, %v812_v5 }
  0xa3   :  { %721 = vmatpush1.bf16.msra.mxu0 %v1557_v37  ;;  %v1598_v37 = vld [vmem:[#allocation7 + $0x114] ss:$8 sps:$4 sm:$0xff]  }
  0xa4   :  { %722 = vmatprep.subr.bf16.mxu0 %v1562_v38  ;;  %v1596_v38 = vld [vmem:[#allocation7 + $0x110] ss:$8 sps:$4 sm:$0xff]  }
  0xa5   :  { %1402 = vmatpush3.bf16.msra.mxu1 %v1626_v8  ;;  %v828_v8 = vpack.i.b16 %v819_v6, %v819_v6  ;;  %v1382_v6 = vld [vmem:[%s2061_s11] ss:$0 sm:$0xff] }
  0xa6   :  { %1403 = vmatprep.subr.bf16.mxu1 %v1627_v9  ;;  %v826_v9 = vrot.slane %v821_v7, %v1991_v22 }
  0xa7   :  { %723 = vmatpush1.bf16.msra.mxu0 %v1560_v39  ;;  %v833_v11 = vrot.slane %v828_v8, %v1991_v22 }
  0xa8   :  { %724 = vmatprep.subr.bf16.mxu0 %v1565_v40  ;;  %v1601_v40 = vld [vmem:[#allocation7 + $0x124] ss:$8 sps:$4 sm:$0xff]  }
  0xa9   :  { %1404 = vmatpush3.bf16.msra.mxu1 %v1628_v10 }
  0xaa   :  { %1405 = vmatprep.subr.bf16.mxu1 %v1629_v61 }
  0xab   :  { %725 = vmatpush1.bf16.msra.mxu0 %v1563_v41 }
  0xac   :  { %726 = vmatprep.subr.bf16.mxu0 %v1568_v42 }
  0xad   :  { %1406 = vmatpush3.bf16.msra.mxu1 %v1630_v62 }
  0xae   :  { %1407 = vmatprep.subr.bf16.mxu1 %v1631_v63 }
  0xaf   :  { %727 = vmatpush1.bf16.msra.mxu0 %v1566_v43 }
  0xb0   :  { %728 = vmatprep.subr.bf16.mxu0 %v1571_v44  ;;  %v1599_v44 = vld [vmem:[#allocation7 + $0x120] ss:$8 sps:$4 sm:$0xff]  }
  0xb1   :  { %1408 = vmatpush3.bf16.msra.mxu1 %v1632_v0 }
  0xb2   :  { %1453 = vmatprep.subr.bf16.mxu1 %v1801_v1 }
  0xb3   :  { %729 = vmatpush1.bf16.msra.mxu0 %v1569_v45  ;;  %v1604_v45 = vld [vmem:[#allocation7 + $0x134] ss:$8 sps:$4 sm:$0xff]  }
  0xb4   :  { %730 = vmatprep.subr.bf16.mxu0 %v1574_v46  ;;  %v1602_v46 = vld [vmem:[#allocation7 + $0x130] ss:$8 sps:$4 sm:$0xff]  }
  0xb7   :  { %731 = vmatpush1.bf16.msra.mxu0 %v1572_v47  ;;  %v1607_v47 = vld [vmem:[#allocation7 + $0x144] ss:$8 sps:$4 sm:$0xff]  }
  0xb8   :  { %732 = vmatprep.subr.bf16.mxu0 %v1577_v48  ;;  %v396_v48 = vcombine.high %v388_v19, %v388_v19 }
  0xbb   :  { %733 = vmatpush1.bf16.msra.mxu0 %v1575_v49  ;;  %v1605_v49 = vld [vmem:[#allocation7 + $0x140] ss:$8 sps:$4 sm:$0xff]  }
  0xbc   :  { %734 = vmatprep.subr.bf16.mxu0 %v1580_v50  ;;  %v1610_v50 = vld [vmem:[#allocation7 + $0x154] ss:$8 sps:$4 sm:$0xff]  }
  0xbf   :  { %735 = vmatpush1.bf16.msra.mxu0 %v1578_v51  ;;  %v412_v51 = vpack.i.b16 %v396_v48, %v396_v48  ;;  %v1648_v48 = vld [vmem:[#allocation11 + $0x38] sm:$0xff]  }
  0xc0   :  { %736 = vmatprep.subr.bf16.mxu0 %v1583_v52  ;;  %v1608_v52 = vld [vmem:[#allocation7 + $0x150] ss:$8 sps:$4 sm:$0xff]  }
  0xc3   :  { %737 = vmatpush1.bf16.msra.mxu0 %v1581_v53  ;;  %v1613_v53 = vld [vmem:[#allocation7 + $0x164] ss:$8 sps:$4 sm:$0xff]  }
  0xc4   :  { %738 = vmatprep.subr.bf16.mxu0 %v1586_v54 }
  0xc7   :  { %739 = vmatpush1.bf16.msra.mxu0 %v1584_v55  ;;  %v417_v55 = vrot.slane %v412_v51, %v1991_v22 }
  0xc8   :  { %740 = vmatprep.subr.bf16.mxu0 %v1589_v56  ;;  %v1611_v56 = vld [vmem:[#allocation7 + $0x160] ss:$8 sps:$4 sm:$0xff]  }
  0xcb   :  { %741 = vmatpush1.bf16.msra.mxu0 %v1587_v57  ;;  %v1616_v57 = vld [vmem:[#allocation7 + $0x174] ss:$8 sps:$4 sm:$0xff]  }
  0xcc   :  { %742 = vmatprep.subr.bf16.mxu0 %v1592_v58 }
  0xcf   :  { %743 = vmatpush1.bf16.msra.mxu0 %v1590_v59  ;;  %v1614_v59 = vld [vmem:[#allocation7 + $0x170] ss:$8 sps:$4 sm:$0xff]  }
  0xd0   :  { %753 = vmatprep.subr.bf16.mxu0 %v1595_v60 }
 0x165   :  { %v322_v25 = vpop.f32.mrb[0].mxu0 }
 0x166   :  { %v369_v27 = vpack.c.bf16 %v322_v25, %v322_v25  ;;  %v324_v28 = vpop.f32.mrb[1].mxu0  ;;  %v1636_v25 = vld [vmem:[#allocation10 + $0x18] sm:$0xff]  }
 0x167   :  { %v370_v29 = vpack.c.bf16 %v324_v28, %v324_v28  ;;  %v326_v30 = vpop.f32.mrb[2].mxu0  ;;  %v363_v39 = vpop.f32.mrb[0].mxu1  ;;  %v1639_v28 = vld [vmem:[#allocation10 + $0x30] sm:$0xff]  }
 0x168   :  { %v418_v31 = vadd.bf16 %v403_v24, %v369_v27  ;;  %v327_v32 = vpop.f32.mrb[3].mxu0  ;;  %v1451_v41 = vpop.f32.mrb[1].mxu1  ;;  %v371_v54 = vpack.c.bf16 %v363_v39, %v363_v39  ;;  %v1635_v24 = vld [vmem:[#allocation10 + $0x10] sm:$0xff]   ;;  %v1638_v27 = vld [vmem:[#allocation10 + $0x28] sm:$0xff]   ;;  %v1007_v30 = vld [vmem:[%s2056_s6] sm:$0x1] }
 0x169   :  { %v419_v33 = vadd.bf16 %v410_v26, %v370_v29  ;;  %v366_v42 = vpop.f32.mrb[2].mxu1  ;;  %v1637_v26 = vld [vmem:[#allocation10 + $0x20] sm:$0xff]   ;;  %v1640_v29 = vld [vmem:[#allocation10 + $0x38] sm:$0xff]  }
 0x16a   :  { %v421_v36 = vmax.bf16 %v1802_v2, %v418_v31  ;;  %v1452_v43 = vpop.f32.mrb[3].mxu1  ;;  %v420_v58 = vadd.bf16 %v417_v55, %v371_v54  ;;  %v1009_v31 = vpack.i.b16 %v1007_v30, %v1007_v30  ;;  %v1642_v42 = vld [vmem:[#allocation11 + $0x8] sm:$0xff]  }
 0x16b   :  { %v422_v34 = vmax.bf16 %v1802_v2, %v419_v33  ;;  %v1643_v43 = vld [vmem:[#allocation11 + $0x10] sm:$0xff]  }
 0x16c   :  { %v423_v60 = vmax.bf16 %v1802_v2, %v420_v58 }
 0x16d   :  { %744 = vmatprep.mubr.bf16.mxu0 %v422_v34 }
 0x16e   :  { %745 = vmatmul.mubr.bf16.vlgmr.msra.gmra.mrb[4].mxu0 %v421_v36 }
 0x16f   :  { %754 = vmatpush1.bf16.msra.mxu0 %v1593_v35  ;;  %785 = vmatprep.mubr.bf16.mxu0 %v1802_v2  ;;  %v1014_v35 = vrot.slane %v1009_v31, %v1991_v22 }
 0x170   :  { %755 = vmatprep.subr.bf16.mxu0 %v1598_v37 }
 0x173   :  { %756 = vmatpush1.bf16.msra.mxu0 %v1596_v38 }
 0x174   :  { %757 = vmatprep.subr.bf16.mxu0 %v1601_v40  ;;  %v1641_v40 = vld [vmem:[#allocation11] sm:$0xff]  }
 0x177   :  { %758 = vmatpush1.bf16.msra.mxu0 %v1599_v44  ;;  %v1644_v44 = vld [vmem:[#allocation11 + $0x18] sm:$0xff]  }
 0x178   :  { %759 = vmatprep.subr.bf16.mxu0 %v1604_v45  ;;  %v1645_v45 = vld [vmem:[#allocation11 + $0x20] sm:$0xff]  }
 0x17b   :  { %760 = vmatpush1.bf16.msra.mxu0 %v1602_v46  ;;  %v1646_v46 = vld [vmem:[#allocation11 + $0x28] sm:$0xff]  }
 0x17c   :  { %761 = vmatprep.subr.bf16.mxu0 %v1607_v47  ;;  %v1647_v47 = vld [vmem:[#allocation11 + $0x30] sm:$0xff]  }
 0x17f   :  { %762 = vmatpush1.bf16.msra.mxu0 %v1605_v49  ;;  %v1122_v49 = vld [vmem:[%s2058_s8] sm:$0x1] }
 0x180   :  { %763 = vmatprep.subr.bf16.mxu0 %v1610_v50  ;;  %v1124_v50 = vpack.i.b16 %v1122_v49, %v1122_v49 }
 0x182   :  { %v1129_v51 = vrot.slane %v1124_v50, %v1991_v22 }
 0x183   :  { %764 = vmatpush1.bf16.msra.mxu0 %v1608_v52 }
 0x184   :  { %765 = vmatprep.subr.bf16.mxu0 %v1613_v53 }
 0x187   :  { %766 = vmatpush1.bf16.msra.mxu0 %v1611_v56 }
 0x188   :  { %767 = vmatprep.subr.bf16.mxu0 %v1616_v57 }
 0x18b   :  { %768 = vmatpush1.bf16.msra.mxu0 %v1614_v59 }
 0x18e   :  { %786 = vmatmul.mubr.bf16.vlgmr.msra.gmra.mrb[4].mxu0 %v423_v60 }
 0x261   :  { %v787_v10 = vpop.f32.mrb[4].mxu0 }
 0x262   :  { %v794_v12 = vpack.c.bf16 %v787_v10, %v787_v10  ;;  %v789_v13 = vpop.f32.mrb[5].mxu0 }
 0x263   :  { %v795_v14 = vpack.c.bf16 %v789_v13, %v789_v13  ;;  %v791_v15 = vpop.f32.mrb[6].mxu0 }
 0x264   :  { %v834_v16 = vadd.bf16 %v826_v9, %v794_v12  ;;  %v792_v18 = vpop.f32.mrb[7].mxu0  ;;  %v1383_v9 = vld [vmem:[#allocation2] ss:$0 sm:$0xff] }
 0x265   :  { %v835_v19 = vadd.bf16 %v833_v11, %v795_v14 }
 0x266   :  { %v836_v23 = vmax.bf16 %v1802_v2, %v834_v16 }
 0x267   :  { %v837_v20 = vmax.bf16 %v1802_v2, %v835_v19 }
 0x269   :  { %998 = vmatprep.mubr.bf16.mxu1 %v837_v20 }
 0x26a   :  { %999 = vmatmul.mubr.bf16.vlgmr.msra.gmra.mrb[4].mxu1 %v836_v23 }
 0x26b   :  { %1454 = vmatpush3.bf16.msra.mxu1 %v1633_v21  ;;  %1469 = vmatprep.mubr.msk.bf16.mxu1 %vm1803_vm0, %v1801_v1 }
 0x26c   :  { %1455 = vmatprep.subr.bf16.mxu1 %v1801_v1 }
 0x26f   :  { %1456 = vmatpush3.bf16.msra.mxu1 %v1634_v17 }
 0x270   :  { %1457 = vmatprep.subr.bf16.mxu1 %v1801_v1 }
 0x273   :  { %1458 = vmatpush3.bf16.msra.mxu1 %v1635_v24 }
 0x274   :  { %1459 = vmatprep.subr.bf16.mxu1 %v1801_v1 }
 0x277   :  { %1460 = vmatpush3.bf16.msra.mxu1 %v1636_v25 }
 0x278   :  { %1461 = vmatprep.subr.bf16.mxu1 %v1801_v1 }
 0x27b   :  { %1462 = vmatpush3.bf16.msra.mxu1 %v1637_v26 }
 0x27c   :  { %1463 = vmatprep.subr.bf16.mxu1 %v1801_v1 }
 0x27f   :  { %1464 = vmatpush3.bf16.msra.mxu1 %v1638_v27 }
 0x280   :  { %1465 = vmatprep.subr.bf16.mxu1 %v1801_v1 }
 0x283   :  { %1466 = vmatpush3.bf16.msra.mxu1 %v1639_v28 }
 0x284   :  { %1467 = vmatprep.subr.bf16.mxu1 %v1801_v1 }
 0x287   :  { %1468 = vmatpush3.bf16.msra.mxu1 %v1640_v29 }
 0x288   :  { %1473 = vmatprep.subr.bf16.mxu1 %v1801_v1 }
 0x33d   :  { %v1409_v32 = vpop.f32.mrb[4].mxu1 }
 0x33e   :  { %v1410_v33 = vpop.f32.mrb[5].mxu1 }
 0x33f   :  { %v1411_v34 = vadd.f32 %v1410_v33, %v1409_v32  ;;  %v1412_v36 = vpop.f32.mrb[6].mxu1 }
 0x340   :  { %v1413_v37 = vpop.f32.mrb[7].mxu1 }
 0x341   :  { %v1006_v38 = vpack.c.bf16 %v1411_v34, %v1411_v34 }
 0x343   :  { %v1015_v39 = vadd.bf16 %v1014_v35, %v1006_v38 }
 0x345   :  { %v1016_v41 = vmax.bf16 %v1802_v2, %v1015_v39 }
 0x347   :  { %1470 = vmatmul.mubr.bf16.vlgmr.msra.gmra.mrb[8].mxu1 %v1016_v41 }
 0x348   :  { %1474 = vmatpush3.bf16.msra.mxu1 %v1641_v40  ;;  %1489 = vmatprep.mubr.msk.bf16.mxu1 %vm1803_vm0, %v1801_v1 }
 0x349   :  { %1475 = vmatprep.subr.bf16.mxu1 %v1801_v1 }
 0x34c   :  { %1476 = vmatpush3.bf16.msra.mxu1 %v1642_v42 }
 0x34d   :  { %1477 = vmatprep.subr.bf16.mxu1 %v1801_v1 }
 0x350   :  { %1478 = vmatpush3.bf16.msra.mxu1 %v1643_v43 }
 0x351   :  { %1479 = vmatprep.subr.bf16.mxu1 %v1801_v1 }
 0x354   :  { %1480 = vmatpush3.bf16.msra.mxu1 %v1644_v44 }
 0x355   :  { %1481 = vmatprep.subr.bf16.mxu1 %v1801_v1 }
 0x358   :  { %1482 = vmatpush3.bf16.msra.mxu1 %v1645_v45 }
 0x359   :  { %1483 = vmatprep.subr.bf16.mxu1 %v1801_v1 }
 0x35c   :  { %1484 = vmatpush3.bf16.msra.mxu1 %v1646_v46 }
 0x35d   :  { %1485 = vmatprep.subr.bf16.mxu1 %v1801_v1 }
 0x360   :  { %1486 = vmatpush3.bf16.msra.mxu1 %v1647_v47 }
 0x361   :  { %1487 = vmatprep.subr.bf16.mxu1 %v1801_v1  ;;  %v1237_v1 = vld [vmem:[%s2060_s10] sm:$0x1] }
 0x362   :  { %v1239_v59 = vpack.i.b16 %v1237_v1, %v1237_v1 }
 0x364   :  { %1488 = vmatpush3.bf16.msra.mxu1 %v1648_v48  ;;  %v1244_v60 = vrot.slane %v1239_v59, %v1991_v22 }
 0x41a   :  { %v1115_v52 = vpop.f32.mrb[8].mxu1 }
 0x41b   :  { %v1121_v53 = vpack.c.bf16 %v1115_v52, %v1115_v52  ;;  %v1471_v54 = vpop.f32.mrb[9].mxu1 }
 0x41c   :  { %v1118_v55 = vpop.f32.mrb[10].mxu1 }
 0x41d   :  { %v1130_v56 = vadd.bf16 %v1129_v51, %v1121_v53  ;;  %v1472_v57 = vpop.f32.mrb[11].mxu1 }
 0x41f   :  { %v1131_v58 = vmax.bf16 %v1802_v2, %v1130_v56 }
 0x421   :  { %1490 = vmatmul.mubr.bf16.vlgmr.msra.gmra.mrb[12].mxu1 %v1131_v58 }
 0x4f4   :  { %v1230_v61 = vpop.f32.mrb[12].mxu1 }
 0x4f5   :  { %v1236_v62 = vpack.c.bf16 %v1230_v61, %v1230_v61  ;;  %v1491_v63 = vpop.f32.mrb[13].mxu1 }
 0x4f6   :  { %v1233_v0 = vpop.f32.mrb[14].mxu1 }
 0x4f7   :  { %v1245_v3 = vadd.bf16 %v1244_v60, %v1236_v62  ;;  %v1492_v4 = vpop.f32.mrb[15].mxu1 }
 0x4f9   :  { %v1246_v5 = vmax.bf16 %v1802_v2, %v1245_v3 }
 0x4fb   :  { %v1247_v7 = vunpack.c.l.bf16 %v1246_v5 }
 0x4fd   :  { %v1255_v8 = vmul.f32 %v1382_v6, %v1247_v7 }
 0x4ff   :  { %1256 = vadd.xlane.f32.xlu0 %v1255_v8 }
 0x58c   :  { %v1257_v10 = vpop.xlane.xlu0 %1256 }
 0x58d   :  { %v1265_v11 = vadd.f32 %v1383_v9, %v1257_v10 }
 0x58f   :  { %1267 = vst.msk [vmem:[%s2063_s13] sm:$0xff] %vm1266_vm1, %v1265_v11 }
 0x590   :  { %1272 = vsyncpa [#allocation4], 1 }
 0x591   :  { %1273 = vsyncpa [#allocation6], 1 }
 0x592   :  { %1274 = vsyncpa [#allocation9], 1 }
 0x593   :  { %1275 = vsyncpa [#allocation12], 1 }

</bundles_post_ra>
